<compile_context>
chip_gen: v7x
topology: tpu7x:2x2x1
jax: 0.10.0
libtpu: 0.0.40
codegen_flags: <defaults>
</compile_context>

<pallas_src>
import math
import jax
import jax.numpy as jnp
from jax.experimental import pallas as pl
from jax.experimental.pallas import tpu as pltpu


# ----------------------------------------------------------------------------
# Tiled matmul + bias:  out = x @ w + b
# Used for both the hoisted input projection (emb @ Wx + b) and the decoder.
# ----------------------------------------------------------------------------
def _matmul_bias_kernel(x_ref, w_ref, b_ref, o_ref, acc_ref):
    k = pl.program_id(2)

    @pl.when(k == 0)
    def _():
        acc_ref[...] = jnp.zeros_like(acc_ref)

    acc_ref[...] += jnp.dot(x_ref[...], w_ref[...],
                            preferred_element_type=jnp.float32)

    @pl.when(k == pl.num_programs(2) - 1)
    def _():
        o_ref[...] = (acc_ref[...] + b_ref[...]).astype(o_ref.dtype)


def _pick_tile(dim, candidates):
    """Largest candidate tile that evenly divides dim, else the full dim."""
    for c in candidates:
        if c <= dim and dim % c == 0:
            return c
    return dim


def matmul_bias(x, w, b, *, out_dtype=jnp.float32):
    """x: (N, K), w: (K, M), b: (M,) -> (N, M); f32 accumulation on the MXU."""
    N, K = x.shape
    M = w.shape[1]
    tm = _pick_tile(N, (512, 256, 128))
    tn = _pick_tile(M, (1024, 512, 256, 128))    # lane-dense output tiles
    tk = _pick_tile(K, (512, 256, 128))
    b2d = b.reshape(1, M).astype(jnp.float32)

    grid = (N // tm, M // tn, K // tk)
    return pl.pallas_call(
        _matmul_bias_kernel,
        out_shape=jax.ShapeDtypeStruct((N, M), out_dtype),
        grid_spec=pltpu.PrefetchScalarGridSpec(
            num_scalar_prefetch=0,
            grid=grid,
            in_specs=[
                pl.BlockSpec((tm, tk), lambda i, j, k: (i, k)),
                pl.BlockSpec((tk, tn), lambda i, j, k: (k, j)),
                pl.BlockSpec((1, tn), lambda i, j, k: (0, j)),
            ],
            out_specs=pl.BlockSpec((tm, tn), lambda i, j, k: (i, j)),
            scratch_shapes=[pltpu.VMEM((tm, tn), jnp.float32)],
        ),
        compiler_params=pltpu.CompilerParams(
            dimension_semantics=("parallel", "parallel", "arbitrary"),
            vmem_limit_bytes=48 * 1024 * 1024,
        ),
    )(x, w, b2d)


# ----------------------------------------------------------------------------
# LSTM recurrence: grid iterates over time CHUNKS; each grid step runs T_BLK
# timesteps with an in-kernel loop. The input projection is already folded
# into xw, so each step only does h @ Wh + nonlinearities on VMEM data.
# ----------------------------------------------------------------------------
def _lstm_recurrence_kernel(xw_ref, wh_ref, h0_ref, c0_ref,
                            hseq_ref, hf_ref, cf_ref,
                            h_sc, c_sc):
    H = wh_ref.shape[0]
    t_blk = xw_ref.shape[0]

    @pl.when(pl.program_id(0) == 0)
    def _():
        h_sc[...] = h0_ref[...].astype(jnp.float32)
        c_sc[...] = c0_ref[...].astype(jnp.float32)

    @pl.loop(0, t_blk)
    def _(t):
        # (B, 4H) gates: precomputed x_t @ Wx + b, plus the recurrent term.
        gates = xw_ref[t] + jnp.dot(h_sc[...], wh_ref[...],
                                    preferred_element_type=jnp.float32)
        # H is a multiple of 128 -> lane-aligned, free slices.
        i_t = jax.nn.sigmoid(gates[:, 0 * H:1 * H])
        f_t = jax.nn.sigmoid(gates[:, 1 * H:2 * H])
        g_t = jnp.tanh(gates[:, 2 * H:3 * H])
        o_t = jax.nn.sigmoid(gates[:, 3 * H:4 * H])
        c_new = f_t * c_sc[...] + i_t * g_t
        h_new = o_t * jnp.tanh(c_new)
        c_sc[...] = c_new
        h_sc[...] = h_new
        hseq_ref[t] = h_new.astype(hseq_ref.dtype)

    # Final states written only once, on the last grid step.
    @pl.when(pl.program_id(0) == pl.num_programs(0) - 1)
    def _():
        hf_ref[...] = h_sc[...].astype(hf_ref.dtype)
        cf_ref[...] = c_sc[...].astype(cf_ref.dtype)


def lstm_recurrence(xw, wh, h0, c0, *, t_blk=None):
    """xw: (seq, B, 4H) = x @ Wx + b. Returns (hidden_seq (seq,B,H), (h_t, c_t))."""
    seq, B, G = xw.shape
    H = wh.shape[0]
    if t_blk is None:
        t_blk = _pick_tile(seq, (64, 32, 16, 8))

    out_shapes = (
        jax.ShapeDtypeStruct((seq, B, H), jnp.float32),   # hidden_seq
        jax.ShapeDtypeStruct((B, H), jnp.float32),        # h_t
        jax.ShapeDtypeStruct((B, H), jnp.float32),        # c_t
    )

    grid_spec = pltpu.PrefetchScalarGridSpec(
        num_scalar_prefetch=0,
        grid=(seq // t_blk,),
        in_specs=[
            pl.BlockSpec((t_blk, B, G), lambda i: (i, 0, 0)),   # xw chunk
            pl.BlockSpec((H, G), lambda i: (0, 0)),             # Wh (resident)
            pl.BlockSpec((B, H), lambda i: (0, 0)),             # h0
            pl.BlockSpec((B, H), lambda i: (0, 0)),             # c0
        ],
        out_specs=[
            pl.BlockSpec((t_blk, B, H), lambda i: (i, 0, 0)),   # hidden_seq chunk
            pl.BlockSpec((B, H), lambda i: (0, 0)),             # h_t (resident)
            pl.BlockSpec((B, H), lambda i: (0, 0)),             # c_t (resident)
        ],
        scratch_shapes=[
            pltpu.VMEM((B, H), jnp.float32),                    # h carry
            pltpu.VMEM((B, H), jnp.float32),                    # c carry
        ],
    )

    hidden_seq, h_t, c_t = pl.pallas_call(
        _lstm_recurrence_kernel,
        out_shape=out_shapes,
        grid_spec=grid_spec,
        compiler_params=pltpu.CompilerParams(
            dimension_semantics=("arbitrary",)),                 # serial recurrence
    )(xw, wh, h0, c0)
    return hidden_seq, (h_t, c_t)


# ----------------------------------------------------------------------------
# RNNModel forward (rnn_type='python_LSTM')
# ----------------------------------------------------------------------------
def rnn_model_forward(params, tokens, hidden):
    """tokens: (seq, batch) int32; hidden: (h0, c0), each (batch, nhid)."""
    # Embedding lookup (glue outside Pallas) + eval-mode dropout (identity).
    emb = jnp.take(params["emb"], tokens, axis=0)               # (seq, B, ninp)
    seq, B, ninp = emb.shape
    H = params["wh"].shape[0]

    # (1) Hoisted input projection: one large batched MXU matmul, bf16 streams.
    xw = matmul_bias(emb.reshape(seq * B, ninp).astype(jnp.bfloat16),
                     params["wx_bf16"], params["b"])
    xw = xw.reshape(seq, B, 4 * H)

    # (2) Time-chunked LSTM recurrence (only the h @ Wh term per step).
    output, hidden_out = lstm_recurrence(xw, params["wh"], hidden[0], hidden[1])

    # (3) Tiled decoder matmul, bf16 weight stream, f32 accumulation.
    decoded = matmul_bias(output.reshape(seq * B, H).astype(jnp.bfloat16),
                          params["dec_w_bf16"], params["dec_b"])
    return decoded.reshape(seq, B, -1), hidden_out


# ----------------------------------------------------------------------------
# Deterministic parameter init (matches the module's shapes; synthetic values)
# ----------------------------------------------------------------------------
def xavier_uniform(key, shape):
    fan_in, fan_out = shape
    bound = math.sqrt(6.0 / (fan_in + fan_out))
    return jax.random.uniform(key, shape, jnp.float32, -bound, bound)


def init_params(key, ntoken, ninp, nhid):
    ks = jax.random.split(key, 12)
    emb = jax.random.uniform(ks[0], (ntoken, ninp), jnp.float32, -0.1, 0.1)
    # NaiveLSTM weights, stacked as [i | f | g | o] along the output axis.
    w_ii = xavier_uniform(ks[1], (ninp, nhid))
    w_if = xavier_uniform(ks[2], (ninp, nhid))
    w_ig = xavier_uniform(ks[3], (ninp, nhid))
    w_io = xavier_uniform(ks[4], (ninp, nhid))
    w_hi = xavier_uniform(ks[5], (nhid, nhid))
    w_hf = xavier_uniform(ks[6], (nhid, nhid))
    w_hg = xavier_uniform(ks[7], (nhid, nhid))
    w_ho = xavier_uniform(ks[8], (nhid, nhid))
    wx = jnp.concatenate([w_ii, w_if, w_ig, w_io], axis=1)      # (ninp, 4H)
    wh = jnp.concatenate([w_hi, w_hf, w_hg, w_ho], axis=1)      # (nhid, 4H)
    b = jnp.zeros((4 * nhid,), jnp.float32)                     # b_i/b_f/b_g/b_o zero-init
    dec_w = jax.random.uniform(ks[9], (nhid, ntoken), jnp.float32, -0.1, 0.1)
    dec_b = jnp.zeros((ntoken,), jnp.float32)
    return dict(emb=emb, wx=wx, wh=wh, b=b, dec_w=dec_w, dec_b=dec_b,
                # bf16 copies streamed by the Pallas matmuls (f32 masters kept
                # for the pure-JAX reference).
                wx_bf16=wx.astype(jnp.bfloat16),
                dec_w_bf16=dec_w.astype(jnp.bfloat16))


# Pure-JAX f32 reference (same math as NaiveLSTM + decoder) for a sanity check.
def reference_forward(params, tokens, hidden):
    emb = jnp.take(params["emb"], tokens, axis=0)
    h, c = hidden
    H = h.shape[1]
    outs = []
    for t in range(emb.shape[0]):
        x_t = emb[t]
        g = x_t @ params["wx"] + h @ params["wh"] + params["b"]
        i_t = jax.nn.sigmoid(g[:, 0 * H:1 * H])
        f_t = jax.nn.sigmoid(g[:, 1 * H:2 * H])
        g_t = jnp.tanh(g[:, 2 * H:3 * H])
        o_t = jax.nn.sigmoid(g[:, 3 * H:4 * H])
        c = f_t * c + i_t * g_t
        h = o_t * jnp.tanh(c)
        outs.append(h)
    out = jnp.stack(outs, axis=0)                               # (seq, B, H)
    dec = out.reshape(-1, H) @ params["dec_w"] + params["dec_b"]
    return dec.reshape(out.shape[0], out.shape[1], -1), (h, c)


if __name__ == "__main__":
    # Small but hardware-aligned shapes: B multiple of 8, features multiples of 128.
    ntoken, ninp, nhid = 2048, 128, 128
    seq, batch = 16, 8

    key = jax.random.PRNGKey(0)
    pkey, tkey = jax.random.split(key)
    params = init_params(pkey, ntoken, ninp, nhid)

    tokens = jax.random.randint(tkey, (seq, batch), 0, ntoken, dtype=jnp.int32)
    hidden0 = (jnp.zeros((batch, nhid), jnp.float32),
               jnp.zeros((batch, nhid), jnp.float32))

    decoded, (h_t, c_t) = rnn_model_forward(params, tokens, hidden0)
    decoded = jax.block_until_ready(decoded)
    h_t = jax.block_until_ready(h_t)
    c_t = jax.block_until_ready(c_t)

    ref_dec, (ref_h, ref_c) = reference_forward(params, tokens, hidden0)
    assert decoded.shape == (seq, batch, ntoken)
    # bf16 matmul inputs (f32 accumulation) vs pure-f32 reference -> looser tol.
    assert jnp.allclose(decoded, ref_dec, atol=2e-2, rtol=2e-2)
    assert jnp.allclose(h_t, ref_h, atol=2e-2, rtol=2e-2)
    assert jnp.allclose(c_t, ref_c, atol=2e-2, rtol=2e-2)

    print("KERNEL_OK")
</pallas_src>

<mosaic_0001>
module attributes {stable_mosaic.version = 11 : i64} {
  func.func @_matmul_bias_kernel(%arg0: i32, %arg1: i32, %arg2: i32, %arg3: memref<128x128xbf16, #tpu.memory_space<vmem>>, %arg4: memref<128x512xbf16, #tpu.memory_space<vmem>>, %arg5: memref<1x512xf32, #tpu.memory_space<vmem>>, %arg6: memref<128x512xf32, #tpu.memory_space<vmem>>, %arg7: memref<128x512xf32, #tpu.memory_space<vmem>>) attributes {dimension_semantics = [#tpu.dimension_semantics<parallel>, #tpu.dimension_semantics<parallel>, #tpu.dimension_semantics<arbitrary>], iteration_bounds = array<i64: 1, 1, 1>, scalar_prefetch = 0 : i64, scratch_operands = 1 : i64, tpu.core_type = #tpu.core_type<tc>, window_params = [{transform_indices = @transform_0, window_bounds = array<i64: 128, 128>}, {transform_indices = @transform_1, window_bounds = array<i64: 128, 512>}, {transform_indices = @transform_2, window_bounds = array<i64: 1, 512>}, {transform_indices = @transform_3, window_bounds = array<i64: 128, 512>}]} {
    %c0_i32 = arith.constant 0 : i32
    %0 = arith.cmpi eq, %arg2, %c0_i32 : i32
    %1 = arith.extui %0 : i1 to i32
    %c0_i32_0 = arith.constant 0 : i32
    %2 = arith.cmpi ne, %1, %c0_i32_0 : i32
    scf.if %2 {
      %cst_10 = arith.constant 0.000000e+00 : f32
      %12 = vector.broadcast %cst_10 : f32 to vector<128x512xf32>
      %c0_11 = arith.constant 0 : index
      %c0_12 = arith.constant 0 : index
      %13 = vector.load %arg7[%c0_11, %c0_12] : memref<128x512xf32, #tpu.memory_space<vmem>>, vector<128x512xf32>
      tpu.vector_store %arg7[%c0_11, %c0_12], %12 {strides = array<i32>} : memref<128x512xf32, #tpu.memory_space<vmem>>, vector<128x512xf32>,
    } else {
    }
    %c0 = arith.constant 0 : index
    %c0_1 = arith.constant 0 : index
    %3 = vector.load %arg7[%c0, %c0_1] : memref<128x512xf32, #tpu.memory_space<vmem>>, vector<128x512xf32>
    %c0_2 = arith.constant 0 : index
    %c0_3 = arith.constant 0 : index
    %4 = vector.load %arg3[%c0_2, %c0_3] : memref<128x128xbf16, #tpu.memory_space<vmem>>, vector<128x128xbf16>
    %c0_4 = arith.constant 0 : index
    %c0_5 = arith.constant 0 : index
    %5 = vector.load %arg4[%c0_4, %c0_5] : memref<128x512xbf16, #tpu.memory_space<vmem>>, vector<128x512xbf16>
    %cst = arith.constant dense<0.000000e+00> : vector<128x512xf32>
    %6 = tpu.matmul %4, %5, %cst {dimension_numbers = #tpu.dot_dimension_numbers<[1], [0], [0], [1], [0, 0, 1, 1], [], []>} : vector<128x128xbf16>, vector<128x512xbf16>, vector<128x512xf32> -> vector<128x512xf32>
    %7 = arith.addf %3, %6 : vector<128x512xf32>
    %c0_6 = arith.constant 0 : index
    %c0_7 = arith.constant 0 : index
    %8 = vector.load %arg7[%c0_6, %c0_7] : memref<128x512xf32, #tpu.memory_space<vmem>>, vector<128x512xf32>
    tpu.vector_store %arg7[%c0_6, %c0_7], %7 {strides = array<i32>} : memref<128x512xf32, #tpu.memory_space<vmem>>, vector<128x512xf32>,
    %c0_i32_8 = arith.constant 0 : i32
    %9 = arith.cmpi eq, %arg2, %c0_i32_8 : i32
    %10 = arith.extui %9 : i1 to i32
    %c0_i32_9 = arith.constant 0 : i32
    %11 = arith.cmpi ne, %10, %c0_i32_9 : i32
    scf.if %11 {
      %c0_10 = arith.constant 0 : index
      %c0_11 = arith.constant 0 : index
      %12 = vector.load %arg7[%c0_10, %c0_11] : memref<128x512xf32, #tpu.memory_space<vmem>>, vector<128x512xf32>
      %c0_12 = arith.constant 0 : index
      %c0_13 = arith.constant 0 : index
      %13 = vector.load %arg5[%c0_12, %c0_13] : memref<1x512xf32, #tpu.memory_space<vmem>>, vector<1x512xf32>
      %14 = vector.broadcast %13 : vector<1x512xf32> to vector<128x512xf32>
      %15 = arith.addf %12, %14 : vector<128x512xf32>
      %c0_14 = arith.constant 0 : index
      %c0_15 = arith.constant 0 : index
      %16 = vector.load %arg6[%c0_14, %c0_15] : memref<128x512xf32, #tpu.memory_space<vmem>>, vector<128x512xf32>
      tpu.vector_store %arg6[%c0_14, %c0_15], %15 {strides = array<i32>} : memref<128x512xf32, #tpu.memory_space<vmem>>, vector<128x512xf32>,
    } else {
    }
    return
  }
  func.func @transform_0(%arg0: i32, %arg1: i32, %arg2: i32) -> (i32, i32) {
    %c0_i32 = arith.constant 0 : i32
    return %arg0, %arg2 : i32, i32
  }
  func.func @transform_1(%arg0: i32, %arg1: i32, %arg2: i32) -> (i32, i32) {
    %c0_i32 = arith.constant 0 : i32
    return %arg2, %arg1 : i32, i32
  }
  func.func @transform_2(%arg0: i32, %arg1: i32, %arg2: i32) -> (i32, i32) {
    %c0_i32 = arith.constant 0 : i32
    %c0_i32_0 = arith.constant 0 : i32
    return %c0_i32, %arg1 : i32, i32
  }
  func.func @transform_3(%arg0: i32, %arg1: i32, %arg2: i32) -> (i32, i32) {
    %c0_i32 = arith.constant 0 : i32
    return %arg0, %arg1 : i32, i32
  }
}

</mosaic_0001>

<bundles_post_ra>
// kernel: tpu_custom_call.1
= control target key start
LH: loop header
LB: loop body
LE: loop exit
PB: predicated region body
PF: predicated region fallthrough
CT: control target
= control target key end

     0   :  { %8 = vsyncpa [#allocation4], 0  ;;  %s1356_s0 = inlined_call_operand.hbm [shape: bf16[128,128], index: 0, kind: input, shape index: {}]   ;;  %s1357_s1 = inlined_call_operand.hbm [shape: bf16[128,512], index: 1, kind: input, shape index: {}]   ;;  %s1358_s2 = inlined_call_operand.vmem [shape: f32[1,512], index: 2, kind: input, shape index: {}]   ;;  %s1359_s3 = inlined_call_operand.hbm [shape: f32[128,512], index: 3, kind: output, shape index: {}]  }
   0x1   :  { %9 = vsyncpa [#allocation7], 0 }
   0x2   :  { %10 = vsyncpa [#allocation5], 0  ;;  %s1199_s12 = smov [#allocation3]   ;;  %s1127_s16 = scalar_lea.hbm %s1356_s0, 1024 }
   0x3   :  { %s16_s13 = sshll.u32 %s1199_s12, 4  ;;  %p1128_p0 = scmp.ne.s32.totalorder %s1356_s0, %s1127_s16  ;;  %s17_s13 = int_to_ptr.vmem [resolvable:$true] %s16_s13 }
   0x4   :  { %p1131_p1 = scmp.lt.u32.totalorder %s1127_s16, %s1356_s0 }
   0x6   :  { %p1133_p2 = pnand %p1131_p1, %p1128_p0 }
   0x8   :  { %1136 = shalt.err (!%p1133_p2)
}
   0x9   :  { %s1137_s21 = scalar_lea.vmem %s17_s13, 1024  ;;  %p1142_p4 = scmp.lt.s32.totalorder %s17_s13, %s17_s13 }
   0xa   :  { %p1138_p3 = scmp.ne.s32.totalorder %s17_s13, %s1137_s21  ;;  %p1143_p5 = scmp.lt.s32.totalorder %s1137_s21, %s1137_s21 }
   0xc   :  { %p1144_p6 = por %p1143_p5, %p1142_p4 }
   0xe   :  { %p1145_p7 = pnand %p1144_p6, %p1138_p3 }
  0x10   :  { %1148 = shalt.err (!%p1145_p7)
}
  0x11   :  { %s1200_s22 = smov 64   ;;  %s1201_s23 = smov 4  }
  0x12   :  { %22 = dma.hbm_to_vmem [thread:$0]  %s1356_s0, 1024, %s17_s13, [#allocation4], %s1200_s22, %s1200_s22, %s1201_s23  }
  0x13   :  { %s1202_s26 = smov [#allocation6]   ;;  %s1149_s30 = scalar_lea.hbm %s1357_s1, 4096 }
  0x14   :  { %s28_s27 = sshll.u32 %s1202_s26, 4  ;;  %p1150_p8 = scmp.ne.s32.totalorder %s1357_s1, %s1149_s30  ;;  %s29_s27 = int_to_ptr.vmem [resolvable:$true] %s28_s27 }
  0x15   :  { %p1153_p9 = scmp.lt.u32.totalorder %s1149_s30, %s1357_s1 }
  0x17   :  { %p1155_p10 = pnand %p1153_p9, %p1150_p8 }
  0x19   :  { %1158 = shalt.err (!%p1155_p10)
}
  0x1a   :  { %s1159_s8 = scalar_lea.vmem %s29_s27, 4096  ;;  %p1164_p12 = scmp.lt.s32.totalorder %s29_s27, %s29_s27 }
  0x1b   :  { %p1160_p11 = scmp.ne.s32.totalorder %s29_s27, %s1159_s8  ;;  %p1165_p13 = scmp.lt.s32.totalorder %s1159_s8, %s1159_s8 }
  0x1d   :  { %p1166_p0 = por %p1165_p13, %p1164_p12 }
  0x1f   :  { %p1167_p1 = pnand %p1166_p0, %p1160_p11 }
  0x21   :  { %1170 = shalt.err (!%p1167_p1)
}
  0x22   :  { %s1203_s0 = smov 256   ;;  %s1204_s9 = smov 16  }
  0x23   :  { %34 = dma.hbm_to_vmem [thread:$0]  %s1357_s1, 4096, %s29_s27, [#allocation7], %s1203_s0, %s1203_s0, %s1204_s9  }
  0x24   :  { %1193 = dma.done.wait [#allocation4], 1024  }
  0x25   :  { %1194 = vsyncadd [#allocation4], 4294966272 }
  0x26   :  { %1195 = dma.done.wait [#allocation7], 4096  }
  0x27   :  { %1196 = vsyncadd [#allocation7], 4294963200  ;;  %v1205_v0 = vmov 0   ;;  %v1071_v1 = vld [vmem:[#allocation6 + $0x4] ss:$16 sps:$4 sm:$0xff]   ;;  %v1120_v34 = vld [vmem:[#allocation3 + $0x8] sm:$0xff]   ;;  %v855_v41 = vlaneseq }
  0x28   :  { %464 = vmatprep.mubr.bf16.mxu0 %v1205_v0  ;;  %577 = vmatprep.mubr.bf16.mxu1 %v1205_v0  ;;  %v1073_v2 = vld [vmem:[#allocation6 + $0xc] ss:$16 sps:$4 sm:$0xff]   ;;  %v1075_v3 = vld [vmem:[#allocation6] ss:$16 sps:$4 sm:$0xff]   ;;  %v1076_v4 = vld [vmem:[#allocation6 + $0x8] ss:$16 sps:$4 sm:$0xff]  }
  0x29   :  { %432 = vmatprep.subr.bf16.mxu0 %v1071_v1  ;;  %545 = vmatprep.subr.bf16.mxu1 %v1073_v2  ;;  %v1077_v5 = vld [vmem:[#allocation6 + $0x24] ss:$16 sps:$4 sm:$0xff]   ;;  %v1079_v6 = vld [vmem:[#allocation6 + $0x2c] ss:$16 sps:$4 sm:$0xff]   ;;  %v1081_v7 = vld [vmem:[#allocation6 + $0x20] ss:$16 sps:$4 sm:$0xff]  }
  0x2a   :  { %433 = vmatpush1.bf16.msra.mxu0 %v1075_v3  ;;  %546 = vmatpush1.bf16.msra.mxu1 %v1076_v4  ;;  %v1082_v8 = vld [vmem:[#allocation6 + $0x28] ss:$16 sps:$4 sm:$0xff]   ;;  %v1083_v9 = vld [vmem:[#allocation6 + $0x44] ss:$16 sps:$4 sm:$0xff]   ;;  %v1085_v10 = vld [vmem:[#allocation6 + $0x4c] ss:$16 sps:$4 sm:$0xff]  }
  0x2b   :  { %434 = vmatprep.subr.bf16.mxu0 %v1077_v5  ;;  %547 = vmatprep.subr.bf16.mxu1 %v1079_v6  ;;  %v1087_v11 = vld [vmem:[#allocation6 + $0x40] ss:$16 sps:$4 sm:$0xff]   ;;  %v1088_v12 = vld [vmem:[#allocation6 + $0x48] ss:$16 sps:$4 sm:$0xff]   ;;  %v1089_v13 = vld [vmem:[#allocation6 + $0x64] ss:$16 sps:$4 sm:$0xff]  }
  0x2c   :  { %v1091_v14 = vld [vmem:[#allocation6 + $0x6c] ss:$16 sps:$4 sm:$0xff]   ;;  %v1093_v15 = vld [vmem:[#allocation6 + $0x60] ss:$16 sps:$4 sm:$0xff]   ;;  %v1094_v16 = vld [vmem:[#allocation6 + $0x68] ss:$16 sps:$4 sm:$0xff]  }
  0x2d   :  { %v1095_v17 = vld [vmem:[#allocation6 + $0x84] ss:$16 sps:$4 sm:$0xff]   ;;  %v1097_v18 = vld [vmem:[#allocation6 + $0x8c] ss:$16 sps:$4 sm:$0xff]   ;;  %v1099_v19 = vld [vmem:[#allocation6 + $0x80] ss:$16 sps:$4 sm:$0xff]  }
  0x2e   :  { %435 = vmatpush1.bf16.msra.mxu0 %v1081_v7  ;;  %548 = vmatpush1.bf16.msra.mxu1 %v1082_v8  ;;  %v1100_v20 = vld [vmem:[#allocation6 + $0x88] ss:$16 sps:$4 sm:$0xff]   ;;  %v1101_v21 = vld [vmem:[#allocation6 + $0xa4] ss:$16 sps:$4 sm:$0xff]   ;;  %v1103_v22 = vld [vmem:[#allocation6 + $0xac] ss:$16 sps:$4 sm:$0xff]  }
  0x2f   :  { %436 = vmatprep.subr.bf16.mxu0 %v1083_v9  ;;  %549 = vmatprep.subr.bf16.mxu1 %v1085_v10  ;;  %v1105_v23 = vld [vmem:[#allocation6 + $0xa0] ss:$16 sps:$4 sm:$0xff]   ;;  %v1106_v24 = vld [vmem:[#allocation6 + $0xa8] ss:$16 sps:$4 sm:$0xff]   ;;  %v1107_v25 = vld [vmem:[#allocation6 + $0xc4] ss:$16 sps:$4 sm:$0xff]  }
  0x30   :  { %v1109_v26 = vld [vmem:[#allocation6 + $0xcc] ss:$16 sps:$4 sm:$0xff]   ;;  %v1111_v27 = vld [vmem:[#allocation6 + $0xc0] ss:$16 sps:$4 sm:$0xff]   ;;  %v1112_v28 = vld [vmem:[#allocation6 + $0xc8] ss:$16 sps:$4 sm:$0xff]  }
  0x31   :  { %v1113_v29 = vld [vmem:[#allocation6 + $0xe4] ss:$16 sps:$4 sm:$0xff]   ;;  %v1115_v30 = vld [vmem:[#allocation6 + $0xec] ss:$16 sps:$4 sm:$0xff]   ;;  %v1117_v31 = vld [vmem:[#allocation6 + $0xe0] ss:$16 sps:$4 sm:$0xff]  }
  0x32   :  { %437 = vmatpush1.bf16.msra.mxu0 %v1087_v11  ;;  %550 = vmatpush1.bf16.msra.mxu1 %v1088_v12  ;;  %v1118_v32 = vld [vmem:[#allocation6 + $0xe8] ss:$16 sps:$4 sm:$0xff]   ;;  %v1119_v33 = vld [vmem:[#allocation3] sm:$0xff]   ;;  %v1121_v35 = vld [vmem:[#allocation3 + $0x10] sm:$0xff]   ;;  %v856_v42 = vshrl.u32 %v855_v41, 7 }
  0x33   :  { %438 = vmatprep.subr.bf16.mxu0 %v1089_v13  ;;  %551 = vmatprep.subr.bf16.mxu1 %v1091_v14  ;;  %v1122_v36 = vld [vmem:[#allocation3 + $0x18] sm:$0xff]   ;;  %v1123_v37 = vld [vmem:[#allocation3 + $0x20] sm:$0xff]   ;;  %v1124_v38 = vld [vmem:[#allocation3 + $0x28] sm:$0xff]  }
  0x34   :  { %v1125_v39 = vld [vmem:[#allocation3 + $0x30] sm:$0xff]   ;;  %v1126_v40 = vld [vmem:[#allocation3 + $0x38] sm:$0xff]   ;;  %v857_v43 = vsub.s32 0, %v856_v42  ;;  %v865_v44 = vsub.s32 2, %v856_v42  ;;  %v853_v45 = vld [vmem:[%s1358_s2] sm:$0xf] }
  0x35   :  { %v861_v46 = vsub.s32 1, %v856_v42  ;;  %v869_v47 = vsub.s32 3, %v856_v42  ;;  %s1206_s2 = smov [#allocation8]  }
  0x36   :  { %439 = vmatpush1.bf16.msra.mxu0 %v1093_v15  ;;  %552 = vmatpush1.bf16.msra.mxu1 %v1094_v16  ;;  %v1272_v48 = vrot.slane %v853_v45, %v857_v43  ;;  %v1274_v49 = vrot.slane %v853_v45, %v865_v44  ;;  %s1008_s13 = sshll.u32 %s1206_s2, 4  ;;  %s1009_s13 = int_to_ptr.vmem [resolvable:$true] %s1008_s13 }
  0x37   :  { %440 = vmatprep.subr.bf16.mxu0 %v1095_v17  ;;  %553 = vmatprep.subr.bf16.mxu1 %v1097_v18  ;;  %v1276_v50 = vrot.slane %v853_v45, %v861_v46  ;;  %v1278_v51 = vrot.slane %v853_v45, %v869_v47  ;;  %s1171_s14 = scalar_lea.vmem %s1009_s13, 8192  ;;  %p1176_p3 = scmp.lt.s32.totalorder %s1009_s13, %s1009_s13 }
  0x38   :  { %p1172_p2 = scmp.ne.s32.totalorder %s1009_s13, %s1171_s14  ;;  %p1177_p4 = scmp.lt.s32.totalorder %s1171_s14, %s1171_s14 }
  0x3a   :  { %441 = vmatpush1.bf16.msra.mxu0 %v1099_v19  ;;  %554 = vmatpush1.bf16.msra.mxu1 %v1100_v20  ;;  %p1178_p5 = por %p1177_p4, %p1176_p3 }
  0x3b   :  { %442 = vmatprep.subr.bf16.mxu0 %v1101_v21  ;;  %555 = vmatprep.subr.bf16.mxu1 %v1103_v22 }
  0x3c   :  { %p1179_p6 = pnand %p1178_p5, %p1172_p2 }
  0x3e   :  { %443 = vmatpush1.bf16.msra.mxu0 %v1105_v23  ;;  %556 = vmatpush1.bf16.msra.mxu1 %v1106_v24 }
  0x3f   :  { %444 = vmatprep.subr.bf16.mxu0 %v1107_v25  ;;  %557 = vmatprep.subr.bf16.mxu1 %v1109_v26 }
  0x42   :  { %445 = vmatpush1.bf16.msra.mxu0 %v1111_v27  ;;  %558 = vmatpush1.bf16.msra.mxu1 %v1112_v28 }
  0x43   :  { %446 = vmatprep.subr.bf16.mxu0 %v1113_v29  ;;  %559 = vmatprep.subr.bf16.mxu1 %v1115_v30 }
  0x46   :  { %447 = vmatpush1.bf16.msra.mxu0 %v1117_v31  ;;  %560 = vmatpush1.bf16.msra.mxu1 %v1118_v32 }
  0x49   :  { %465 = vmatmul.mubr.bf16.vlgmr.msra.gmra.mrb[0].mxu0 %v1119_v33  ;;  %578 = vmatmul.mubr.bf16.vlgmr.msra.gmra.mrb[0].mxu1 %v1119_v33 }
  0x4a   :  { %474 = vmatprep.mubr.bf16.mxu0 %v1205_v0  ;;  %587 = vmatprep.mubr.bf16.mxu1 %v1205_v0 }
  0x51   :  { %475 = vmatmul.mubr.bf16.gmra.mrb[4].mxu0 %v1120_v34  ;;  %588 = vmatmul.mubr.bf16.gmra.mrb[4].mxu1 %v1120_v34 }
  0x52   :  { %484 = vmatprep.mubr.bf16.mxu0 %v1205_v0  ;;  %597 = vmatprep.mubr.bf16.mxu1 %v1205_v0 }
  0x59   :  { %485 = vmatmul.mubr.bf16.gmra.mrb[8].mxu0 %v1121_v35  ;;  %598 = vmatmul.mubr.bf16.gmra.mrb[8].mxu1 %v1121_v35 }
  0x5a   :  { %494 = vmatprep.mubr.bf16.mxu0 %v1205_v0  ;;  %607 = vmatprep.mubr.bf16.mxu1 %v1205_v0 }
  0x61   :  { %495 = vmatmul.mubr.bf16.gmra.mrb[12].mxu0 %v1122_v36  ;;  %608 = vmatmul.mubr.bf16.gmra.mrb[12].mxu1 %v1122_v36 }
  0x62   :  { %504 = vmatprep.mubr.bf16.mxu0 %v1205_v0  ;;  %617 = vmatprep.mubr.bf16.mxu1 %v1205_v0 }
  0x69   :  { %505 = vmatmul.mubr.bf16.gmra.mrb[16].mxu0 %v1123_v37  ;;  %618 = vmatmul.mubr.bf16.gmra.mrb[16].mxu1 %v1123_v37 }
  0x6a   :  { %514 = vmatprep.mubr.bf16.mxu0 %v1205_v0  ;;  %627 = vmatprep.mubr.bf16.mxu1 %v1205_v0 }
  0x71   :  { %515 = vmatmul.mubr.bf16.gmra.mrb[20].mxu0 %v1124_v38  ;;  %628 = vmatmul.mubr.bf16.gmra.mrb[20].mxu1 %v1124_v38 }
  0x72   :  { %524 = vmatprep.mubr.bf16.mxu0 %v1205_v0  ;;  %637 = vmatprep.mubr.bf16.mxu1 %v1205_v0 }
  0x79   :  { %525 = vmatmul.mubr.bf16.gmra.mrb[24].mxu0 %v1125_v39  ;;  %638 = vmatmul.mubr.bf16.gmra.mrb[24].mxu1 %v1125_v39 }
  0x7a   :  { %534 = vmatprep.mubr.bf16.mxu0 %v1205_v0  ;;  %647 = vmatprep.mubr.bf16.mxu1 %v1205_v0 }
  0x81   :  { %535 = vmatmul.mubr.bf16.gmra.mrb[28].mxu0 %v1126_v40  ;;  %648 = vmatmul.mubr.bf16.gmra.mrb[28].mxu1 %v1126_v40 }
 0x11c   :  { %v466_v52 = vpop.f32.mrb[0].mxu0  ;;  %v579_v53 = vpop.f32.mrb[0].mxu1 }
 0x11d   :  { %v875_v54 = vadd.f32 %v1272_v48, %v466_v52  ;;  %v877_v55 = vadd.f32 %v1274_v49, %v579_v53  ;;  %v468_v56 = vpop.f32.mrb[1].mxu0  ;;  %v581_v57 = vpop.f32.mrb[1].mxu1 }
 0x11e   :  { %v876_v58 = vadd.f32 %v1276_v50, %v468_v56  ;;  %v878_v59 = vadd.f32 %v1278_v51, %v581_v57  ;;  %v470_v60 = vpop.f32.mrb[2].mxu0  ;;  %v583_v61 = vpop.f32.mrb[2].mxu1 }
 0x11f   :  { %939 = vst [vmem:[#allocation8] sm:$0xff] %v875_v54  ;;  %941 = vst [vmem:[#allocation8 + $0x10] sm:$0xff] %v877_v55  ;;  %v879_v62 = vadd.f32 %v1272_v48, %v470_v60  ;;  %v881_v63 = vadd.f32 %v1274_v49, %v583_v61  ;;  %v472_v0 = vpop.f32.mrb[3].mxu0  ;;  %v585_v1 = vpop.f32.mrb[3].mxu1 }
 0x120   :  { %940 = vst [vmem:[#allocation8 + $0x8] sm:$0xff] %v876_v58  ;;  %942 = vst [vmem:[#allocation8 + $0x18] sm:$0xff] %v878_v59  ;;  %v880_v2 = vadd.f32 %v1276_v50, %v472_v0  ;;  %v882_v3 = vadd.f32 %v1278_v51, %v585_v1 }
 0x121   :  { %943 = vst [vmem:[#allocation8 + $0x20] sm:$0xff] %v879_v62  ;;  %945 = vst [vmem:[#allocation8 + $0x30] sm:$0xff] %v881_v63 }
 0x122   :  { %944 = vst [vmem:[#allocation8 + $0x28] sm:$0xff] %v880_v2  ;;  %946 = vst [vmem:[#allocation8 + $0x38] sm:$0xff] %v882_v3 }
 0x124   :  { %v476_v4 = vpop.f32.mrb[4].mxu0  ;;  %v589_v5 = vpop.f32.mrb[4].mxu1 }
 0x125   :  { %v883_v6 = vadd.f32 %v1272_v48, %v476_v4  ;;  %v885_v7 = vadd.f32 %v1274_v49, %v589_v5  ;;  %v478_v8 = vpop.f32.mrb[5].mxu0  ;;  %v591_v9 = vpop.f32.mrb[5].mxu1 }
 0x126   :  { %v884_v10 = vadd.f32 %v1276_v50, %v478_v8  ;;  %v886_v11 = vadd.f32 %v1278_v51, %v591_v9  ;;  %v480_v12 = vpop.f32.mrb[6].mxu0  ;;  %v593_v13 = vpop.f32.mrb[6].mxu1 }
 0x127   :  { %947 = vst [vmem:[#allocation8 + $0x40] sm:$0xff] %v883_v6  ;;  %949 = vst [vmem:[#allocation8 + $0x50] sm:$0xff] %v885_v7  ;;  %v887_v14 = vadd.f32 %v1272_v48, %v480_v12  ;;  %v889_v15 = vadd.f32 %v1274_v49, %v593_v13  ;;  %v482_v16 = vpop.f32.mrb[7].mxu0  ;;  %v595_v17 = vpop.f32.mrb[7].mxu1 }
 0x128   :  { %948 = vst [vmem:[#allocation8 + $0x48] sm:$0xff] %v884_v10  ;;  %950 = vst [vmem:[#allocation8 + $0x58] sm:$0xff] %v886_v11  ;;  %v888_v18 = vadd.f32 %v1276_v50, %v482_v16  ;;  %v890_v19 = vadd.f32 %v1278_v51, %v595_v17 }
 0x129   :  { %951 = vst [vmem:[#allocation8 + $0x60] sm:$0xff] %v887_v14  ;;  %953 = vst [vmem:[#allocation8 + $0x70] sm:$0xff] %v889_v15 }
 0x12a   :  { %952 = vst [vmem:[#allocation8 + $0x68] sm:$0xff] %v888_v18  ;;  %954 = vst [vmem:[#allocation8 + $0x78] sm:$0xff] %v890_v19 }
 0x12c   :  { %v486_v20 = vpop.f32.mrb[8].mxu0  ;;  %v599_v21 = vpop.f32.mrb[8].mxu1 }
 0x12d   :  { %v891_v22 = vadd.f32 %v1272_v48, %v486_v20  ;;  %v893_v23 = vadd.f32 %v1274_v49, %v599_v21  ;;  %v488_v24 = vpop.f32.mrb[9].mxu0  ;;  %v601_v25 = vpop.f32.mrb[9].mxu1 }
 0x12e   :  { %v892_v26 = vadd.f32 %v1276_v50, %v488_v24  ;;  %v894_v27 = vadd.f32 %v1278_v51, %v601_v25  ;;  %v490_v28 = vpop.f32.mrb[10].mxu0  ;;  %v603_v29 = vpop.f32.mrb[10].mxu1 }
 0x12f   :  { %955 = vst [vmem:[#allocation8 + $0x80] sm:$0xff] %v891_v22  ;;  %957 = vst [vmem:[#allocation8 + $0x90] sm:$0xff] %v893_v23  ;;  %v895_v30 = vadd.f32 %v1272_v48, %v490_v28  ;;  %v897_v31 = vadd.f32 %v1274_v49, %v603_v29  ;;  %v492_v32 = vpop.f32.mrb[11].mxu0  ;;  %v605_v33 = vpop.f32.mrb[11].mxu1 }
 0x130   :  { %956 = vst [vmem:[#allocation8 + $0x88] sm:$0xff] %v892_v26  ;;  %958 = vst [vmem:[#allocation8 + $0x98] sm:$0xff] %v894_v27  ;;  %v896_v34 = vadd.f32 %v1276_v50, %v492_v32  ;;  %v898_v35 = vadd.f32 %v1278_v51, %v605_v33 }
 0x131   :  { %959 = vst [vmem:[#allocation8 + $0xa0] sm:$0xff] %v895_v30  ;;  %961 = vst [vmem:[#allocation8 + $0xb0] sm:$0xff] %v897_v31 }
 0x132   :  { %960 = vst [vmem:[#allocation8 + $0xa8] sm:$0xff] %v896_v34  ;;  %962 = vst [vmem:[#allocation8 + $0xb8] sm:$0xff] %v898_v35 }
 0x134   :  { %v496_v36 = vpop.f32.mrb[12].mxu0  ;;  %v609_v37 = vpop.f32.mrb[12].mxu1 }
 0x135   :  { %v899_v38 = vadd.f32 %v1272_v48, %v496_v36  ;;  %v901_v39 = vadd.f32 %v1274_v49, %v609_v37  ;;  %v498_v40 = vpop.f32.mrb[13].mxu0  ;;  %v611_v41 = vpop.f32.mrb[13].mxu1 }
 0x136   :  { %v900_v42 = vadd.f32 %v1276_v50, %v498_v40  ;;  %v902_v43 = vadd.f32 %v1278_v51, %v611_v41  ;;  %v500_v44 = vpop.f32.mrb[14].mxu0  ;;  %v613_v45 = vpop.f32.mrb[14].mxu1 }
 0x137   :  { %963 = vst [vmem:[#allocation8 + $0xc0] sm:$0xff] %v899_v38  ;;  %965 = vst [vmem:[#allocation8 + $0xd0] sm:$0xff] %v901_v39  ;;  %v903_v46 = vadd.f32 %v1272_v48, %v500_v44  ;;  %v905_v47 = vadd.f32 %v1274_v49, %v613_v45  ;;  %v502_v52 = vpop.f32.mrb[15].mxu0  ;;  %v615_v53 = vpop.f32.mrb[15].mxu1 }
 0x138   :  { %964 = vst [vmem:[#allocation8 + $0xc8] sm:$0xff] %v900_v42  ;;  %966 = vst [vmem:[#allocation8 + $0xd8] sm:$0xff] %v902_v43  ;;  %v904_v54 = vadd.f32 %v1276_v50, %v502_v52  ;;  %v906_v55 = vadd.f32 %v1278_v51, %v615_v53 }
 0x139   :  { %967 = vst [vmem:[#allocation8 + $0xe0] sm:$0xff] %v903_v46  ;;  %969 = vst [vmem:[#allocation8 + $0xf0] sm:$0xff] %v905_v47 }
 0x13a   :  { %968 = vst [vmem:[#allocation8 + $0xe8] sm:$0xff] %v904_v54  ;;  %970 = vst [vmem:[#allocation8 + $0xf8] sm:$0xff] %v906_v55 }
 0x13c   :  { %v506_v56 = vpop.f32.mrb[16].mxu0  ;;  %v619_v57 = vpop.f32.mrb[16].mxu1 }
 0x13d   :  { %v907_v58 = vadd.f32 %v1272_v48, %v506_v56  ;;  %v909_v59 = vadd.f32 %v1274_v49, %v619_v57  ;;  %v508_v60 = vpop.f32.mrb[17].mxu0  ;;  %v621_v61 = vpop.f32.mrb[17].mxu1 }
 0x13e   :  { %v908_v62 = vadd.f32 %v1276_v50, %v508_v60  ;;  %v910_v63 = vadd.f32 %v1278_v51, %v621_v61  ;;  %v510_v0 = vpop.f32.mrb[18].mxu0  ;;  %v623_v1 = vpop.f32.mrb[18].mxu1 }
 0x13f   :  { %971 = vst [vmem:[#allocation8 + $0x100] sm:$0xff] %v907_v58  ;;  %973 = vst [vmem:[#allocation8 + $0x110] sm:$0xff] %v909_v59  ;;  %v911_v2 = vadd.f32 %v1272_v48, %v510_v0  ;;  %v913_v3 = vadd.f32 %v1274_v49, %v623_v1  ;;  %v512_v4 = vpop.f32.mrb[19].mxu0  ;;  %v625_v5 = vpop.f32.mrb[19].mxu1 }
 0x140   :  { %972 = vst [vmem:[#allocation8 + $0x108] sm:$0xff] %v908_v62  ;;  %974 = vst [vmem:[#allocation8 + $0x118] sm:$0xff] %v910_v63  ;;  %v912_v6 = vadd.f32 %v1276_v50, %v512_v4  ;;  %v914_v7 = vadd.f32 %v1278_v51, %v625_v5 }
 0x141   :  { %975 = vst [vmem:[#allocation8 + $0x120] sm:$0xff] %v911_v2  ;;  %977 = vst [vmem:[#allocation8 + $0x130] sm:$0xff] %v913_v3 }
 0x142   :  { %976 = vst [vmem:[#allocation8 + $0x128] sm:$0xff] %v912_v6  ;;  %978 = vst [vmem:[#allocation8 + $0x138] sm:$0xff] %v914_v7 }
 0x144   :  { %v516_v8 = vpop.f32.mrb[20].mxu0  ;;  %v629_v9 = vpop.f32.mrb[20].mxu1 }
 0x145   :  { %v915_v10 = vadd.f32 %v1272_v48, %v516_v8  ;;  %v917_v11 = vadd.f32 %v1274_v49, %v629_v9  ;;  %v518_v12 = vpop.f32.mrb[21].mxu0  ;;  %v631_v13 = vpop.f32.mrb[21].mxu1 }
 0x146   :  { %v916_v14 = vadd.f32 %v1276_v50, %v518_v12  ;;  %v918_v15 = vadd.f32 %v1278_v51, %v631_v13  ;;  %v520_v16 = vpop.f32.mrb[22].mxu0  ;;  %v633_v17 = vpop.f32.mrb[22].mxu1 }
 0x147   :  { %979 = vst [vmem:[#allocation8 + $0x140] sm:$0xff] %v915_v10  ;;  %981 = vst [vmem:[#allocation8 + $0x150] sm:$0xff] %v917_v11  ;;  %v919_v18 = vadd.f32 %v1272_v48, %v520_v16  ;;  %v921_v19 = vadd.f32 %v1274_v49, %v633_v17  ;;  %v522_v20 = vpop.f32.mrb[23].mxu0  ;;  %v635_v21 = vpop.f32.mrb[23].mxu1 }
 0x148   :  { %980 = vst [vmem:[#allocation8 + $0x148] sm:$0xff] %v916_v14  ;;  %982 = vst [vmem:[#allocation8 + $0x158] sm:$0xff] %v918_v15  ;;  %v920_v22 = vadd.f32 %v1276_v50, %v522_v20  ;;  %v922_v23 = vadd.f32 %v1278_v51, %v635_v21 }
 0x149   :  { %983 = vst [vmem:[#allocation8 + $0x160] sm:$0xff] %v919_v18  ;;  %985 = vst [vmem:[#allocation8 + $0x170] sm:$0xff] %v921_v19 }
 0x14a   :  { %984 = vst [vmem:[#allocation8 + $0x168] sm:$0xff] %v920_v22  ;;  %986 = vst [vmem:[#allocation8 + $0x178] sm:$0xff] %v922_v23 }
 0x14c   :  { %v526_v24 = vpop.f32.mrb[24].mxu0  ;;  %v639_v25 = vpop.f32.mrb[24].mxu1 }
 0x14d   :  { %v923_v26 = vadd.f32 %v1272_v48, %v526_v24  ;;  %v925_v27 = vadd.f32 %v1274_v49, %v639_v25  ;;  %v528_v28 = vpop.f32.mrb[25].mxu0  ;;  %v641_v29 = vpop.f32.mrb[25].mxu1 }
 0x14e   :  { %v924_v30 = vadd.f32 %v1276_v50, %v528_v28  ;;  %v926_v31 = vadd.f32 %v1278_v51, %v641_v29  ;;  %v530_v32 = vpop.f32.mrb[26].mxu0  ;;  %v643_v33 = vpop.f32.mrb[26].mxu1 }
 0x14f   :  { %987 = vst [vmem:[#allocation8 + $0x180] sm:$0xff] %v923_v26  ;;  %989 = vst [vmem:[#allocation8 + $0x190] sm:$0xff] %v925_v27  ;;  %v927_v34 = vadd.f32 %v1272_v48, %v530_v32  ;;  %v929_v35 = vadd.f32 %v1274_v49, %v643_v33  ;;  %v532_v36 = vpop.f32.mrb[27].mxu0  ;;  %v645_v37 = vpop.f32.mrb[27].mxu1 }
 0x150   :  { %988 = vst [vmem:[#allocation8 + $0x188] sm:$0xff] %v924_v30  ;;  %990 = vst [vmem:[#allocation8 + $0x198] sm:$0xff] %v926_v31  ;;  %v928_v38 = vadd.f32 %v1276_v50, %v532_v36  ;;  %v930_v39 = vadd.f32 %v1278_v51, %v645_v37 }
 0x151   :  { %991 = vst [vmem:[#allocation8 + $0x1a0] sm:$0xff] %v927_v34  ;;  %993 = vst [vmem:[#allocation8 + $0x1b0] sm:$0xff] %v929_v35 }
 0x152   :  { %992 = vst [vmem:[#allocation8 + $0x1a8] sm:$0xff] %v928_v38  ;;  %994 = vst [vmem:[#allocation8 + $0x1b8] sm:$0xff] %v930_v39 }
 0x154   :  { %v536_v40 = vpop.f32.mrb[28].mxu0  ;;  %v649_v41 = vpop.f32.mrb[28].mxu1 }
 0x155   :  { %v931_v42 = vadd.f32 %v1272_v48, %v536_v40  ;;  %v933_v43 = vadd.f32 %v1274_v49, %v649_v41  ;;  %v538_v44 = vpop.f32.mrb[29].mxu0  ;;  %v651_v45 = vpop.f32.mrb[29].mxu1 }
 0x156   :  { %v932_v46 = vadd.f32 %v1276_v50, %v538_v44  ;;  %v934_v47 = vadd.f32 %v1278_v51, %v651_v45  ;;  %v540_v52 = vpop.f32.mrb[30].mxu0  ;;  %v653_v53 = vpop.f32.mrb[30].mxu1 }
 0x157   :  { %995 = vst [vmem:[#allocation8 + $0x1c0] sm:$0xff] %v931_v42  ;;  %997 = vst [vmem:[#allocation8 + $0x1d0] sm:$0xff] %v933_v43  ;;  %v935_v54 = vadd.f32 %v1272_v48, %v540_v52  ;;  %v937_v55 = vadd.f32 %v1274_v49, %v653_v53  ;;  %v542_v56 = vpop.f32.mrb[31].mxu0  ;;  %v655_v57 = vpop.f32.mrb[31].mxu1 }
 0x158   :  { %996 = vst [vmem:[#allocation8 + $0x1c8] sm:$0xff] %v932_v46  ;;  %998 = vst [vmem:[#allocation8 + $0x1d8] sm:$0xff] %v934_v47  ;;  %v936_v58 = vadd.f32 %v1276_v50, %v542_v56  ;;  %v938_v59 = vadd.f32 %v1278_v51, %v655_v57 }
 0x159   :  { %999 = vst [vmem:[#allocation8 + $0x1e0] sm:$0xff] %v935_v54  ;;  %1001 = vst [vmem:[#allocation8 + $0x1f0] sm:$0xff] %v937_v55 }
 0x15a   :  { %1000 = vst [vmem:[#allocation8 + $0x1e8] sm:$0xff] %v936_v58  ;;  %1002 = vst [vmem:[#allocation8 + $0x1f8] sm:$0xff] %v938_v59 }
 0x15b   :  { %1182 = shalt.err (!%p1179_p6)
}
 0x15c   :  { %s1183_s17 = scalar_lea.hbm %s1359_s3, 8192 }
 0x15d   :  { %p1184_p7 = scmp.ne.s32.totalorder %s1359_s3, %s1183_s17  ;;  %p1187_p8 = scmp.lt.u32.totalorder %s1183_s17, %s1359_s3 }
 0x15f   :  { %p1189_p9 = pnand %p1187_p8, %p1184_p7 }
 0x161   :  { %1192 = shalt.err (!%p1189_p9)
}
 0x162   :  { %s1207_s22 = smov 512   ;;  %s1208_s23 = smov 32  }
 0x163   :  { %1014 = dma.vmem_to_hbm [thread:$0]  %s1009_s13, 8192, %s1359_s3, [#allocation5], %s1207_s22, %s1207_s22, %s1208_s23  }
 0x164   :  { %1197 = dma.done.wait [#allocation5], 8192  }
 0x165   :  { %1198 = vsyncadd [#allocation5], 4294959104 }
 0x166   :  { %1018 = vsyncpa [#allocation4], 1 }
 0x167   :  { %1019 = vsyncpa [#allocation7], 1 }
 0x168   :  { %1020 = vsyncpa [#allocation5], 1 }

</bundles_post_ra>
